<compile_context>
chip_gen: v7x
topology: tpu7x:2x2x1
jax: 0.10.0
libtpu: 0.0.40
codegen_flags: <defaults>
</compile_context>

<pallas_src>
import functools

import jax
import jax.numpy as jnp
from jax.experimental import pallas as pl
from jax.experimental.pallas import tpu as pltpu


def _round_up(n, m):
    return ((n + m - 1) // m) * m


def _policy_kernel(x_ref, w1_ref, b1_ref, w2_ref, b2_ref, wh_ref, bh_ref,
                   out_ref, *, a_dim):
    # fc1 + relu (MXU dot, f32 accumulation; bias add / relu in f32)
    h1 = jnp.dot(x_ref[...], w1_ref[...],
                 preferred_element_type=jnp.float32) + b1_ref[...]
    h1 = jnp.maximum(h1, 0.0)

    # fc2 + relu
    h2 = jnp.dot(h1.astype(w2_ref.dtype), w2_ref[...],
                 preferred_element_type=jnp.float32) + b2_ref[...]
    h2 = jnp.maximum(h2, 0.0)

    # fused, zero-padded heads: lanes [0, A) -> mu, lanes [A, 2A) -> std,
    # lanes [2A, n_out) are padding (never read back by the wrapper).
    y = jnp.dot(h2.astype(wh_ref.dtype), wh_ref[...],
                preferred_element_type=jnp.float32) + bh_ref[...]

    lane = jax.lax.broadcasted_iota(jnp.int32, y.shape, 1)
    mu = jnp.tanh(y)
    # numerically stable softplus: max(y, 0) + log1p(exp(-|y|)), then +1e-8
    softplus = jnp.maximum(y, 0.0) + jnp.log1p(jnp.exp(-jnp.abs(y))) + 1e-8
    # TODO(synk): once A is itself a multiple of 128, split y with static
    # lane-aligned slices and drop the iota/select (halves EUP work).
    out_ref[...] = jnp.where(lane < a_dim, mu, softplus)


def prepare_params(params, *, dot_dtype=jnp.float32):
    """One-time packing of PolicyNet params for the fused kernel.

    * concatenates + zero-pads the mu/std heads into a lane-dense
      [H, max(128, round_up(2A, 128))] weight and matching bias row,
    * pre-casts matmul operands to dot_dtype (e.g. bf16 on v6e/v7x),
    * keeps biases (and the f32 epilogue path) in f32.
    Call at init / after a parameter update, NOT inside the rollout loop.
    """
    A = params["wmu"].shape[1]
    H = params["wmu"].shape[0]
    n_out = max(128, _round_up(2 * A, 128))

    wh = jnp.zeros((H, n_out), jnp.float32)
    wh = wh.at[:, :A].set(params["wmu"])
    wh = wh.at[:, A:2 * A].set(params["wstd"])
    bh = jnp.zeros((1, n_out), jnp.float32)
    bh = bh.at[:, :A].set(params["bmu"])
    bh = bh.at[:, A:2 * A].set(params["bstd"])

    return dict(
        w1=params["w1"].astype(dot_dtype), b1=params["b1"],
        w2=params["w2"].astype(dot_dtype), b2=params["b2"],
        wh=wh.astype(dot_dtype), bh=bh,
    )


@functools.partial(jax.jit, static_argnames=("action_dim", "block_b"))
def policy_net_forward(x, prepared, action_dim, *, block_b=512):
    """x: [B, state_dim] f32, prepared: output of prepare_params().

    Returns (mu [B, A], std [B, A]) in f32.
    """
    B, S = x.shape
    A = action_dim
    w1, b1 = prepared["w1"], prepared["b1"]
    w2, b2 = prepared["w2"], prepared["b2"]
    wh, bh = prepared["wh"], prepared["bh"]
    n_out = wh.shape[1]

    xd = x.astype(w1.dtype)

    # Batch tile: single grid step when the whole batch fits (per-step overhead
    # dominates at PPO head sizes); otherwise round the tile to the packed
    # sublane multiple of the dot dtype (8 f32, 16 bf16, 32 int8/fp8).
    # NOTE(v7x): for large B prefer a block_b that yields an even grid count
    # >= 2 so the "parallel" batch axis shards across both TensorCores.
    sublane = max(8, 32 // jnp.dtype(w1.dtype).itemsize)
    if B <= block_b:
        tb = B
    else:
        tb = max(sublane, (block_b // sublane) * sublane)
    grid = (pl.cdiv(B, tb),)

    x_spec = pl.BlockSpec((tb, S), lambda i: (i, 0))
    out_spec = pl.BlockSpec((tb, n_out), lambda i: (i, 0))

    # Weights / biases: full-array blocks with constant index maps -> DMA'd
    # once, VMEM-resident across grid steps.  Single-buffered since they never
    # change (halves their VMEM footprint; relevant on v7x's 64 MiB VMEM).
    def resident(shape):
        return pl.BlockSpec(shape, lambda i, _nd=len(shape): (0,) * _nd,
                            pipeline_mode=pl.Buffered(1))

    out = pl.pallas_call(
        functools.partial(_policy_kernel, a_dim=A),
        grid=grid,
        in_specs=[x_spec,
                  resident(w1.shape), resident(b1.shape),
                  resident(w2.shape), resident(b2.shape),
                  resident(wh.shape), resident(bh.shape)],
        out_specs=out_spec,
        out_shape=jax.ShapeDtypeStruct((B, n_out), jnp.float32),
        compiler_params=pltpu.CompilerParams(
            dimension_semantics=("parallel",)),
    )(xd, w1, b1, w2, b2, wh, bh)

    # Cheap static slices; consumers that prefer zero extra passes can consume
    # the packed [B, n_out] slab directly (mu = [:, :A], std = [:, A:2A]).
    return out[:, :A], out[:, A:2 * A]


def init_params(key, state_dim, hidden_dim, action_dim):
    """PyTorch-style uniform(-1/sqrt(fan_in), 1/sqrt(fan_in)) init.

    Weights stored as [in_features, out_features] so the kernel does x @ W + b.
    """
    def linear(key, fan_in, fan_out):
        kw, kb = jax.random.split(key)
        bound = 1.0 / jnp.sqrt(fan_in)
        w = jax.random.uniform(kw, (fan_in, fan_out), jnp.float32, -bound, bound)
        b = jax.random.uniform(kb, (1, fan_out), jnp.float32, -bound, bound)
        return w, b

    k1, k2, k3, k4 = jax.random.split(key, 4)
    w1, b1 = linear(k1, state_dim, hidden_dim)
    w2, b2 = linear(k2, hidden_dim, hidden_dim)
    wmu, bmu = linear(k3, hidden_dim, action_dim)
    wstd, bstd = linear(k4, hidden_dim, action_dim)
    return dict(w1=w1, b1=b1, w2=w2, b2=b2,
                wmu=wmu, bmu=bmu, wstd=wstd, bstd=bstd)


if __name__ == "__main__":
    # Small PPO-policy-head shapes.
    batch, state_dim, hidden_dim, action_dim = 64, 16, 32, 4

    key = jax.random.PRNGKey(0)
    k_params, k_x = jax.random.split(key)
    params = init_params(k_params, state_dim, hidden_dim, action_dim)
    x = jax.random.normal(k_x, (batch, state_dim), jnp.float32)

    # Pure-JAX reference.
    h1 = jnp.maximum(x @ params["w1"] + params["b1"], 0.0)
    h2 = jnp.maximum(h1 @ params["w2"] + params["b2"], 0.0)
    mu_ref = jnp.tanh(h2 @ params["wmu"] + params["bmu"])
    std_ref = jax.nn.softplus(h2 @ params["wstd"] + params["bstd"]) + 1e-8

    # f32 path, default block_b -> single grid step.
    prep_f32 = prepare_params(params)
    mu, std = policy_net_forward(x, prep_f32, action_dim)
    jax.block_until_ready((mu, std))
    assert mu.shape == (batch, action_dim) and std.shape == (batch, action_dim)
    assert jnp.allclose(mu, mu_ref, atol=1e-5)
    assert jnp.allclose(std, std_ref, atol=1e-5)
    assert bool(jnp.all(std > 0))

    # Tiled path (2 grid steps) exercising VMEM-resident weights across steps.
    mu_t, std_t = policy_net_forward(x, prep_f32, action_dim, block_b=32)
    jax.block_until_ready((mu_t, std_t))
    assert jnp.allclose(mu_t, mu_ref, atol=1e-5)
    assert jnp.allclose(std_t, std_ref, atol=1e-5)

    # bf16 dot-input path (MXU-native on v6e/v7x); looser tolerance expected.
    prep_bf16 = prepare_params(params, dot_dtype=jnp.bfloat16)
    mu_b, std_b = policy_net_forward(x, prep_bf16, action_dim)
    jax.block_until_ready((mu_b, std_b))
    assert jnp.allclose(mu_b, mu_ref, atol=5e-2)
    assert jnp.allclose(std_b, std_ref, atol=5e-2)
    assert bool(jnp.all(std_b > 0))

    print("KERNEL_OK")
</pallas_src>

<mosaic_0001>
module attributes {stable_mosaic.version = 11 : i64} {
  func.func @_policy_kernel(%arg0: i32, %arg1: memref<64x16xf32, #tpu.memory_space<vmem>>, %arg2: memref<16x32xf32, #tpu.memory_space<vmem>>, %arg3: memref<1x32xf32, #tpu.memory_space<vmem>>, %arg4: memref<32x32xf32, #tpu.memory_space<vmem>>, %arg5: memref<1x32xf32, #tpu.memory_space<vmem>>, %arg6: memref<32x128xf32, #tpu.memory_space<vmem>>, %arg7: memref<1x128xf32, #tpu.memory_space<vmem>>, %arg8: memref<64x128xf32, #tpu.memory_space<vmem>>) attributes {dimension_semantics = [#tpu.dimension_semantics<parallel>], iteration_bounds = array<i64: 1>, scalar_prefetch = 0 : i64, scratch_operands = 0 : i64, tpu.core_type = #tpu.core_type<tc>, window_params = [{transform_indices = @transform_0, window_bounds = array<i64: 64, 16>}, {pipeline_mode = #tpu.pipeline_mode<synchronous>, transform_indices = @transform_1, window_bounds = array<i64: 16, 32>}, {pipeline_mode = #tpu.pipeline_mode<synchronous>, transform_indices = @transform_2, window_bounds = array<i64: 1, 32>}, {pipeline_mode = #tpu.pipeline_mode<synchronous>, transform_indices = @transform_3, window_bounds = array<i64: 32, 32>}, {pipeline_mode = #tpu.pipeline_mode<synchronous>, transform_indices = @transform_4, window_bounds = array<i64: 1, 32>}, {pipeline_mode = #tpu.pipeline_mode<synchronous>, transform_indices = @transform_5, window_bounds = array<i64: 32, 128>}, {pipeline_mode = #tpu.pipeline_mode<synchronous>, transform_indices = @transform_6, window_bounds = array<i64: 1, 128>}, {transform_indices = @transform_7, window_bounds = array<i64: 64, 128>}]} {
    %c0 = arith.constant 0 : index
    %c0_0 = arith.constant 0 : index
    %0 = vector.load %arg1[%c0, %c0_0] : memref<64x16xf32, #tpu.memory_space<vmem>>, vector<64x16xf32>
    %c0_1 = arith.constant 0 : index
    %c0_2 = arith.constant 0 : index
    %1 = vector.load %arg2[%c0_1, %c0_2] : memref<16x32xf32, #tpu.memory_space<vmem>>, vector<16x32xf32>
    %cst = arith.constant dense<0.000000e+00> : vector<64x32xf32>
    %2 = tpu.matmul %0, %1, %cst {dimension_numbers = #tpu.dot_dimension_numbers<[1], [0], [0], [1], [0, 0, 1, 1], [], []>} : vector<64x16xf32>, vector<16x32xf32>, vector<64x32xf32> -> vector<64x32xf32>
    %c0_3 = arith.constant 0 : index
    %c0_4 = arith.constant 0 : index
    %3 = vector.load %arg3[%c0_3, %c0_4] : memref<1x32xf32, #tpu.memory_space<vmem>>, vector<1x32xf32>
    %4 = vector.broadcast %3 : vector<1x32xf32> to vector<64x32xf32>
    %5 = arith.addf %2, %4 : vector<64x32xf32>
    %cst_5 = arith.constant 0.000000e+00 : f32
    %6 = vector.broadcast %cst_5 : f32 to vector<64x32xf32>
    %7 = arith.maximumf %5, %6 : vector<64x32xf32>
    %c0_6 = arith.constant 0 : index
    %c0_7 = arith.constant 0 : index
    %8 = vector.load %arg4[%c0_6, %c0_7] : memref<32x32xf32, #tpu.memory_space<vmem>>, vector<32x32xf32>
    %cst_8 = arith.constant dense<0.000000e+00> : vector<64x32xf32>
    %9 = tpu.matmul %7, %8, %cst_8 {dimension_numbers = #tpu.dot_dimension_numbers<[1], [0], [0], [1], [0, 0, 1, 1], [], []>} : vector<64x32xf32>, vector<32x32xf32>, vector<64x32xf32> -> vector<64x32xf32>
    %c0_9 = arith.constant 0 : index
    %c0_10 = arith.constant 0 : index
    %10 = vector.load %arg5[%c0_9, %c0_10] : memref<1x32xf32, #tpu.memory_space<vmem>>, vector<1x32xf32>
    %11 = vector.broadcast %10 : vector<1x32xf32> to vector<64x32xf32>
    %12 = arith.addf %9, %11 : vector<64x32xf32>
    %cst_11 = arith.constant 0.000000e+00 : f32
    %13 = vector.broadcast %cst_11 : f32 to vector<64x32xf32>
    %14 = arith.maximumf %12, %13 : vector<64x32xf32>
    %c0_12 = arith.constant 0 : index
    %c0_13 = arith.constant 0 : index
    %15 = vector.load %arg6[%c0_12, %c0_13] : memref<32x128xf32, #tpu.memory_space<vmem>>, vector<32x128xf32>
    %cst_14 = arith.constant dense<0.000000e+00> : vector<64x128xf32>
    %16 = tpu.matmul %14, %15, %cst_14 {dimension_numbers = #tpu.dot_dimension_numbers<[1], [0], [0], [1], [0, 0, 1, 1], [], []>} : vector<64x32xf32>, vector<32x128xf32>, vector<64x128xf32> -> vector<64x128xf32>
    %c0_15 = arith.constant 0 : index
    %c0_16 = arith.constant 0 : index
    %17 = vector.load %arg7[%c0_15, %c0_16] : memref<1x128xf32, #tpu.memory_space<vmem>>, vector<1x128xf32>
    %18 = vector.broadcast %17 : vector<1x128xf32> to vector<64x128xf32>
    %19 = arith.addf %16, %18 : vector<64x128xf32>
    %20 = tpu.iota {dimensions = array<i32: 1>} : vector<64x128xi32>
    %21 = math.tanh %19 : vector<64x128xf32>
    %cst_17 = arith.constant 0.000000e+00 : f32
    %22 = vector.broadcast %cst_17 : f32 to vector<64x128xf32>
    %23 = arith.maximumf %19, %22 : vector<64x128xf32>
    %24 = math.absf %19 : vector<64x128xf32>
    %cst_18 = arith.constant 0.000000e+00 : f32
    %25 = vector.broadcast %cst_18 : f32 to vector<64x128xf32>
    %26 = arith.subf %25, %24 : vector<64x128xf32>
    %27 = math.exp %26 : vector<64x128xf32>
    %28 = math.log1p %27 : vector<64x128xf32>
    %29 = arith.addf %23, %28 : vector<64x128xf32>
    %cst_19 = arith.constant 9.99999993E-9 : f32
    %30 = vector.broadcast %cst_19 : f32 to vector<64x128xf32>
    %31 = arith.addf %29, %30 : vector<64x128xf32>
    %c4_i32 = arith.constant 4 : i32
    %32 = vector.broadcast %c4_i32 : i32 to vector<64x128xi32>
    %33 = arith.cmpi slt, %20, %32 : vector<64x128xi32>
    %34 = arith.select %33, %21, %31 : vector<64x128xi1>, vector<64x128xf32>
    %c0_20 = arith.constant 0 : index
    %c0_21 = arith.constant 0 : index
    %35 = vector.load %arg8[%c0_20, %c0_21] : memref<64x128xf32, #tpu.memory_space<vmem>>, vector<64x128xf32>
    tpu.vector_store %arg8[%c0_20, %c0_21], %34 {strides = array<i32>} : memref<64x128xf32, #tpu.memory_space<vmem>>, vector<64x128xf32>,
    return
  }
  func.func @transform_0(%arg0: i32) -> (i32, i32) {
    %c0_i32 = arith.constant 0 : i32
    %c0_i32_0 = arith.constant 0 : i32
    return %arg0, %c0_i32 : i32, i32
  }
  func.func @transform_1(%arg0: i32) -> (i32, i32) {
    %c0_i32 = arith.constant 0 : i32
    %c0_i32_0 = arith.constant 0 : i32
    %c0_i32_1 = arith.constant 0 : i32
    return %c0_i32, %c0_i32_0 : i32, i32
  }
  func.func @transform_2(%arg0: i32) -> (i32, i32) {
    %c0_i32 = arith.constant 0 : i32
    %c0_i32_0 = arith.constant 0 : i32
    %c0_i32_1 = arith.constant 0 : i32
    return %c0_i32, %c0_i32_0 : i32, i32
  }
  func.func @transform_3(%arg0: i32) -> (i32, i32) {
    %c0_i32 = arith.constant 0 : i32
    %c0_i32_0 = arith.constant 0 : i32
    %c0_i32_1 = arith.constant 0 : i32
    return %c0_i32, %c0_i32_0 : i32, i32
  }
  func.func @transform_4(%arg0: i32) -> (i32, i32) {
    %c0_i32 = arith.constant 0 : i32
    %c0_i32_0 = arith.constant 0 : i32
    %c0_i32_1 = arith.constant 0 : i32
    return %c0_i32, %c0_i32_0 : i32, i32
  }
  func.func @transform_5(%arg0: i32) -> (i32, i32) {
    %c0_i32 = arith.constant 0 : i32
    %c0_i32_0 = arith.constant 0 : i32
    %c0_i32_1 = arith.constant 0 : i32
    return %c0_i32, %c0_i32_0 : i32, i32
  }
  func.func @transform_6(%arg0: i32) -> (i32, i32) {
    %c0_i32 = arith.constant 0 : i32
    %c0_i32_0 = arith.constant 0 : i32
    %c0_i32_1 = arith.constant 0 : i32
    return %c0_i32, %c0_i32_0 : i32, i32
  }
  func.func @transform_7(%arg0: i32) -> (i32, i32) {
    %c0_i32 = arith.constant 0 : i32
    %c0_i32_0 = arith.constant 0 : i32
    return %arg0, %c0_i32 : i32, i32
  }
}

</mosaic_0001>

<bundles_post_ra>
// kernel: policy_net_forward.1
= control target key start
LH: loop header
LB: loop body
LE: loop exit
PB: predicated region body
PF: predicated region fallthrough
CT: control target
= control target key end

     0   :  { %vm43_vm0 = vcmask 130048   ;;  %vm192_vm1 = vcmask 261120   ;;  %s1106_s1 = inlined_call_operand.vmem [shape: f32[16,32], index: 1, kind: input, shape index: {}]   ;;  %s1107_s0 = inlined_call_operand.vmem [shape: f32[64,16], index: 0, kind: input, shape index: {}]   ;;  %s1108_s3 = inlined_call_operand.vmem [shape: f32[32,32], index: 3, kind: input, shape index: {}]   ;;  %s1109_s5 = inlined_call_operand.vmem [shape: f32[32,128], index: 5, kind: input, shape index: {}]   ;;  %s1110_s2 = inlined_call_operand.vmem [shape: f32[1,32], index: 2, kind: input, shape index: {}]   ;;  %s1111_s4 = inlined_call_operand.vmem [shape: f32[1,32], index: 4, kind: input, shape index: {}]   ;;  %s1112_s6 = inlined_call_operand.vmem [shape: f32[1,128], index: 6, kind: input, shape index: {}]   ;;  %s1113_s7 = inlined_call_operand.vmem [shape: f32[64,128], index: 7, kind: output, shape index: {}]  }
   0x1   :  { %v34_v0 = vld [vmem:[%s1106_s1] sm:$0xff]  ;;  %v35_v1 = vld [vmem:[%s1106_s1 + $0x8] sm:$0xff]  ;;  %v28_v10 = vld [vmem:[%s1107_s0 + $0x10] sm:$0xff] }
   0x2   :  { %v26_v2 = vld [vmem:[%s1107_s0] sm:$0xff]  ;;  %v746_v3 = vpack.c.bf16 %v35_v1, %v34_v0  ;;  %v182_v6 = vld [vmem:[%s1108_s3 + $0x8] sm:$0xff]  ;;  %v32_v11 = vld [vmem:[%s1107_s0 + $0x30] sm:$0xff] }
   0x3   :  { %694 = vmatprep.mubr.msk.f32.mxu0 %vm43_vm0, %v26_v2  ;;  %v30_v4 = vld [vmem:[%s1107_s0 + $0x20] sm:$0xff]  ;;  %v27_v7 = vld [vmem:[%s1107_s0 + $0x8] sm:$0xff]  ;;  %v29_v12 = vld [vmem:[%s1107_s0 + $0x18] sm:$0xff] }
   0x4   :  { %747 = vmatprep.subr.bf16.mxu0 %v746_v3  ;;  %766 = vmatprep.subr.bf16.mxu1 %v746_v3  ;;  %v181_v5 = vld [vmem:[%s1108_s3] sm:$0xff]  ;;  %v31_v8 = vld [vmem:[%s1107_s0 + $0x28] sm:$0xff]  ;;  %v33_v13 = vld [vmem:[%s1107_s0 + $0x38] sm:$0xff] }
   0x5   :  { %749 = vmatpush3.bf16.msra.mxu0 %v746_v3  ;;  %767 = vmatpush3.bf16.msra.mxu1 %v746_v3  ;;  %v750_v9 = vpack.c.bf16 %v182_v6, %v181_v5  ;;  %v183_v14 = vld [vmem:[%s1108_s3 + $0x10] sm:$0xff]  ;;  %v184_v15 = vld [vmem:[%s1108_s3 + $0x18] sm:$0xff]  ;;  %v330_v17 = vld [vmem:[%s1109_s5] sm:$0xff] }
   0x6   :  { %700 = vmatprep.mubr.msk.f32.mxu1 %vm43_vm0, %v30_v4  ;;  %v754_v16 = vpack.c.bf16 %v184_v15, %v183_v14  ;;  %v331_v18 = vld [vmem:[%s1109_s5 + $0x8] sm:$0xff]  ;;  %v629_v20 = vld [vmem:[%s1110_s2] ss:$0 sm:$0xff]  ;;  %v332_v45 = vld [vmem:[%s1109_s5 + $0x10] sm:$0xff] }
   0x7   :  { %751 = vmatprep.subr.bf16.mxu1 %v750_v9  ;;  %v758_v19 = vpack.c.bf16 %v331_v18, %v330_v17  ;;  %v333_v46 = vld [vmem:[%s1109_s5 + $0x18] sm:$0xff]  ;;  %v638_v48 = vld [vmem:[%s1111_s4] ss:$0 sm:$0xff] }
   0x8   :  { %695 = vmatmul.mubr.msk.f32.vlgmr.msra.gmra.mrb[0].mxu0 %vm43_vm0, %v27_v7  ;;  %701 = vmatmul.mubr.msk.f32.vlgmr.msra.gmra.mrb[0].mxu1 %vm43_vm0, %v31_v8  ;;  %v762_v47 = vpack.c.bf16 %v333_v46, %v332_v45 }
   0x9   :  { %697 = vmatprep.mubr.msk.f32.mxu0 %vm43_vm0, %v28_v10  ;;  %703 = vmatprep.mubr.msk.f32.mxu1 %vm43_vm0, %v32_v11 }
   0xa   :  { %753 = vmatpush3.bf16.msra.mxu1 %v750_v9  ;;  %759 = vmatprep.subr.bf16.mxu0 %v758_v19  ;;  %v647_v9 = vld [vmem:[%s1112_s6] ss:$0 sm:$0xff] }
   0xb   :  { %755 = vmatprep.subr.bf16.mxu1 %v754_v16  ;;  %761 = vmatpush3.bf16.msra.mxu0 %v758_v19 }
   0xc   :  { %698 = vmatmul.mubr.msk.f32.gmra.mrb[2].mxu0 %vm43_vm0, %v29_v12  ;;  %704 = vmatmul.mubr.msk.f32.gmra.mrb[2].mxu1 %vm43_vm0, %v33_v13 }
   0xd   :  { %763 = vmatprep.subr.bf16.mxu0 %v762_v47 }
   0xe   :  { %757 = vmatpush3.bf16.msra.mxu1 %v754_v16 }
   0xf   :  { %765 = vmatpush3.bf16.msra.mxu0 %v762_v47 }
  0xdb   :  { %v696_v21 = vpop.f32.mrb[0].mxu0  ;;  %v702_v22 = vpop.f32.mrb[0].mxu1 }
  0xdc   :  { %v140_v23 = vadd.f32 %v696_v21, %v629_v20  ;;  %v134_v24 = vpop.f32.mrb[1].mxu0  ;;  %v154_v25 = vpop.f32.mrb[1].mxu1  ;;  %v160_v40 = vadd.f32 %v702_v22, %v629_v20 }
  0xdd   :  { %v135_v26 = vadd.f32 %v629_v20, %v134_v24  ;;  %v155_v29 = vadd.f32 %v629_v20, %v154_v25 }
  0xde   :  { %v174_v31 = vmax.f32 %v140_v23, 0.0  ;;  %v178_v42 = vmax.f32 %v160_v40, 0.0 }
  0xdf   :  { %v173_v27 = vmax.f32 %v135_v26, 0.0  ;;  %v699_v28 = vpop.f32.mrb[2].mxu0  ;;  %v705_v30 = vpop.f32.mrb[2].mxu1  ;;  %v177_v37 = vmax.f32 %v155_v29, 0.0 }
  0xe0   :  { %v150_v32 = vadd.f32 %v699_v28, %v629_v20  ;;  %v144_v33 = vpop.f32.mrb[3].mxu0  ;;  %v164_v34 = vpop.f32.mrb[3].mxu1  ;;  %v170_v43 = vadd.f32 %v705_v30, %v629_v20 }
  0xe1   :  { %v145_v35 = vadd.f32 %v629_v20, %v144_v33  ;;  %714 = vmatprep.mubr.msk.f32.mxu1 %vm192_vm1, %v173_v27  ;;  %v165_v38 = vadd.f32 %v629_v20, %v164_v34 }
  0xe2   :  { %715 = vmatmul.mubr.msk.f32.vlgmr.msra.gmra.mrb[4].mxu1 %vm192_vm1, %v174_v31  ;;  %v176_v39 = vmax.f32 %v150_v32, 0.0  ;;  %v180_v44 = vmax.f32 %v170_v43, 0.0 }
  0xe3   :  { %v175_v36 = vmax.f32 %v145_v35, 0.0  ;;  %v179_v41 = vmax.f32 %v165_v38, 0.0 }
  0xe5   :  { %717 = vmatprep.mubr.msk.f32.mxu1 %vm192_vm1, %v175_v36 }
  0xe6   :  { %718 = vmatmul.mubr.msk.f32.gmra.mrb[6].mxu1 %vm192_vm1, %v176_v39 }
  0xe7   :  { %720 = vmatprep.mubr.msk.f32.mxu1 %vm192_vm1, %v177_v37 }
  0xea   :  { %721 = vmatmul.mubr.msk.f32.gmra.mrb[8].mxu1 %vm192_vm1, %v178_v42 }
  0xeb   :  { %723 = vmatprep.mubr.msk.f32.mxu1 %vm192_vm1, %v179_v41 }
  0xee   :  { %724 = vmatmul.mubr.msk.f32.gmra.mrb[10].mxu1 %vm192_vm1, %v180_v44 }
 0x1b5   :  { %v716_v49 = vpop.f32.mrb[4].mxu1 }
 0x1b6   :  { %v289_v50 = vadd.f32 %v716_v49, %v638_v48  ;;  %v283_v51 = vpop.f32.mrb[5].mxu1  ;;  %v470_v49 = vlaneseq }
 0x1b7   :  { %v284_v52 = vadd.f32 %v638_v48, %v283_v51 }
 0x1b8   :  { %v323_v55 = vmax.f32 %v289_v50, 0.0 }
 0x1b9   :  { %v322_v53 = vmax.f32 %v284_v52, 0.0  ;;  %v719_v54 = vpop.f32.mrb[6].mxu1 }
 0x1ba   :  { %v299_v56 = vadd.f32 %v719_v54, %v638_v48  ;;  %v293_v57 = vpop.f32.mrb[7].mxu1 }
 0x1bb   :  { %v294_v58 = vadd.f32 %v638_v48, %v293_v57  ;;  %734 = vmatprep.mubr.msk.f32.mxu0 %vm192_vm1, %v322_v53 }
 0x1bc   :  { %735 = vmatmul.mubr.msk.f32.vlgmr.msra.gmra.mrb[4].mxu0 %vm192_vm1, %v323_v55  ;;  %v325_v61 = vmax.f32 %v299_v56, 0.0  ;;  %v978_v55 = vand.u32 127, %v470_v49 }
 0x1bd   :  { %v324_v59 = vmax.f32 %v294_v58, 0.0  ;;  %v722_v60 = vpop.f32.mrb[8].mxu1 }
 0x1be   :  { %v309_v62 = vadd.f32 %v722_v60, %v638_v48  ;;  %v303_v63 = vpop.f32.mrb[9].mxu1  ;;  %vm608_vm2 = vcmp.lt.s32.totalorder %v978_v55, 4 }
 0x1bf   :  { %v304_v0 = vadd.f32 %v638_v48, %v303_v63  ;;  %737 = vmatprep.mubr.msk.f32.mxu0 %vm192_vm1, %v324_v59 }
 0x1c0   :  { %738 = vmatmul.mubr.msk.f32.gmra.mrb[6].mxu0 %vm192_vm1, %v325_v61  ;;  %v327_v3 = vmax.f32 %v309_v62, 0.0 }
 0x1c1   :  { %v326_v1 = vmax.f32 %v304_v0, 0.0  ;;  %v725_v2 = vpop.f32.mrb[10].mxu1 }
 0x1c2   :  { %v319_v4 = vadd.f32 %v725_v2, %v638_v48  ;;  %v313_v5 = vpop.f32.mrb[11].mxu1 }
 0x1c3   :  { %v314_v6 = vadd.f32 %v638_v48, %v313_v5  ;;  %740 = vmatprep.mubr.msk.f32.mxu0 %vm192_vm1, %v326_v1 }
 0x1c4   :  { %741 = vmatmul.mubr.msk.f32.gmra.mrb[8].mxu0 %vm192_vm1, %v327_v3  ;;  %v329_v8 = vmax.f32 %v319_v4, 0.0 }
 0x1c5   :  { %v328_v7 = vmax.f32 %v314_v6, 0.0 }
 0x1c7   :  { %743 = vmatprep.mubr.msk.f32.mxu0 %vm192_vm1, %v328_v7 }
 0x1c8   :  { %744 = vmatmul.mubr.msk.f32.gmra.mrb[10].mxu0 %vm192_vm1, %v329_v8 }
 0x28f   :  { %v736_v10 = vpop.f32.mrb[4].mxu0 }
 0x290   :  { %v943_v11 = vadd.f32 %v736_v10, %v647_v9  ;;  %v431_v12 = vpop.f32.mrb[5].mxu0 }
 0x291   :  { %v945_v13 = vadd.f32 %v647_v9, %v431_v12 }
 0x292   :  { %v489_v14 = vand.u32 2147483647, %v943_v11  ;;  %v481_v0 = vmax.f32 %v943_v11, 0.0 }
 0x293   :  { %v488_v15 = vand.u32 2147483647, %v945_v13  ;;  %v739_v16 = vpop.f32.mrb[6].mxu0  ;;  %v480_v2 = vmax.f32 %v945_v13, 0.0 }
 0x294   :  { %v497_v17 = vsub.f32 0.0, %v489_v14  ;;  %v949_v18 = vadd.f32 %v739_v16, %v647_v9  ;;  %v441_v19 = vpop.f32.mrb[7].mxu0 }
 0x295   :  { %v496_v20 = vsub.f32 0.0, %v488_v15  ;;  %v951_v21 = vadd.f32 %v647_v9, %v441_v19 }
 0x296   :  { %v506_v22 = vmul.f32 1.442695, %v497_v17  ;;  %v491_v23 = vand.u32 2147483647, %v949_v18  ;;  %v483_v5 = vmax.f32 %v949_v18, 0.0 }
 0x297   :  { %v504_v24 = vmul.f32 1.442695, %v496_v20  ;;  %v490_v25 = vand.u32 2147483647, %v951_v21  ;;  %v742_v26 = vpop.f32.mrb[8].mxu0 }
 0x298   :  { %768 = vpow2.f32 %v506_v22  ;;  %v499_v27 = vsub.f32 0.0, %v491_v23  ;;  %v955_v28 = vadd.f32 %v742_v26, %v647_v9  ;;  %v451_v29 = vpop.f32.mrb[9].mxu0 }
 0x299   :  { %770 = vpow2.f32 %v504_v24  ;;  %v498_v30 = vsub.f32 0.0, %v490_v25  ;;  %v957_v31 = vadd.f32 %v647_v9, %v451_v29 }
 0x29a   :  { %v510_v32 = vmul.f32 1.442695, %v499_v27  ;;  %v493_v33 = vand.u32 2147483647, %v955_v28  ;;  %v485_v15 = vmax.f32 %v955_v28, 0.0 }
 0x29b   :  { %v508_v34 = vmul.f32 1.442695, %v498_v30  ;;  %v492_v35 = vand.u32 2147483647, %v957_v31  ;;  %v745_v36 = vpop.f32.mrb[10].mxu0 }
 0x29c   :  { %772 = vpow2.f32 %v510_v32  ;;  %v501_v37 = vsub.f32 0.0, %v493_v33  ;;  %v961_v38 = vadd.f32 %v745_v36, %v647_v9  ;;  %v461_v39 = vpop.f32.mrb[11].mxu0 }
 0x29d   :  { %774 = vpow2.f32 %v508_v34  ;;  %v500_v40 = vsub.f32 0.0, %v492_v35  ;;  %v966_v45 = vadd.f32 %v647_v9, %v461_v39 }
 0x29e   :  { %776 = vtanh.f32 %v943_v11  ;;  %v514_v41 = vmul.f32 1.442695, %v501_v37  ;;  %v495_v42 = vand.u32 2147483647, %v961_v38 }
 0x29f   :  { %778 = vtanh.f32 %v945_v13  ;;  %v512_v43 = vmul.f32 1.442695, %v500_v40  ;;  %v494_v52 = vand.u32 2147483647, %v966_v45  ;;  %v482_v13 = vmax.f32 %v951_v21, 0.0 }
 0x2a0   :  { %780 = vpow2.f32 %v514_v41  ;;  %v503_v44 = vsub.f32 0.0, %v495_v42 }
 0x2a1   :  { %782 = vpow2.f32 %v512_v43  ;;  %v502_v61 = vsub.f32 0.0, %v494_v52 }
 0x2a2   :  { %v769_v46 = vpop.eup %768  ;;  %784 = vtanh.f32 %v949_v18  ;;  %v518_v47 = vmul.f32 1.442695, %v503_v44 }
 0x2a3   :  { %v969_v48 = vpop.eup %770  ;;  %v529_v50 = vadd.f32 1.0, %v769_v46  ;;  %786 = vtanh.f32 %v951_v21  ;;  %v532_v56 = vmul.f32 -0.5, %v769_v46  ;;  %v535_v1 = vand.u32 2147483647, %v769_v46 }
 0x2a4   :  { %v520_v51 = vadd.f32 1.0, %v969_v48  ;;  %788 = vpow2.f32 %v518_v47  ;;  %v523_v59 = vmul.f32 -0.5, %v969_v48  ;;  %v516_v11 = vmul.f32 1.442695, %v502_v61 }
 0x2a5   :  { %790 = vlog2.f32 %v529_v50  ;;  %v533_v4 = vadd.f32 1.0, %v532_v56  ;;  %vm1010_vm3 = vcmp.lt.f32.partialorder %v535_v1, 0.0004427343  ;;  %v526_v18 = vand.u32 2147483647, %v969_v48 }
 0x2a6   :  { %v974_v53 = vpop.eup %772  ;;  %792 = vlog2.f32 %v520_v51  ;;  %v524_v8 = vadd.f32 1.0, %v523_v59 }
 0x2a7   :  { %v976_v54 = vpop.eup %774  ;;  %v547_v57 = vadd.f32 1.0, %v974_v53  ;;  %794 = vtanh.f32 %v955_v28  ;;  %v550_v9 = vmul.f32 -0.5, %v974_v53  ;;  %v553_v19 = vand.u32 2147483647, %v974_v53 }
 0x2a8   :  { %v982_v58 = vpop.eup %776  ;;  %v538_v60 = vadd.f32 1.0, %v976_v54  ;;  %796 = vtanh.f32 %v957_v31  ;;  %v541_v14 = vmul.f32 -0.5, %v976_v54  ;;  %v534_v22 = vmul.f32 %v769_v46, %v533_v4 }
 0x2a9   :  { %v987_v62 = vpop.eup %778  ;;  %798 = vlog2.f32 %v547_v57  ;;  %v544_v21 = vand.u32 2147483647, %v976_v54  ;;  %v525_v27 = vmul.f32 %v969_v48, %v524_v8  ;;  %v551_v29 = vadd.f32 1.0, %v550_v9 }
 0x2aa   :  { %v989_v63 = vpop.eup %780  ;;  %800 = vlog2.f32 %v538_v60  ;;  %v542_v33 = vadd.f32 1.0, %v541_v14  ;;  %vm527_vm4 = vcmp.lt.f32.partialorder %v526_v18, 0.0004427343  ;;  %vm1027_vm5 = vcmp.lt.f32.partialorder %v553_v19, 0.0004427343 }
 0x2ab   :  { %v993_v3 = vpop.eup %782  ;;  %v565_v6 = vadd.f32 1.0, %v989_v63  ;;  %802 = vtanh.f32 %v961_v38  ;;  %v568_v23 = vmul.f32 -0.5, %v989_v63  ;;  %v571_v39 = vand.u32 2147483647, %v989_v63 }
 0x2ac   :  { %v998_v7 = vpop.eup %784  ;;  %v556_v10 = vadd.f32 1.0, %v993_v3  ;;  %v559_v34 = vmul.f32 -0.5, %v993_v3  ;;  %vm1032_vm6 = vcmp.lt.f32.partialorder %v544_v21, 0.0004427343  ;;  %v552_v49 = vmul.f32 %v974_v53, %v551_v29 }
 0x2ad   :  { %v1003_v12 = vpop.eup %786  ;;  %804 = vlog2.f32 %v565_v6  ;;  %v569_v44 = vadd.f32 1.0, %v568_v23  ;;  %v543_v57 = vmul.f32 %v976_v54, %v542_v33  ;;  %vm1041_vm7 = vcmp.lt.f32.partialorder %v571_v39, 0.0004427343 }
 0x2ae   :  { %v1008_v16 = vpop.eup %788  ;;  %806 = vlog2.f32 %v556_v10  ;;  %v560_v59 = vadd.f32 1.0, %v559_v34  ;;  %v562_v1 = vand.u32 2147483647, %v993_v3  ;;  %v486_v39 = vmax.f32 %v966_v45, 0.0 }
 0x2af   :  { %v791_v20 = vpop.eup %790  ;;  %v583_v24 = vadd.f32 1.0, %v1008_v16  ;;  %808 = vpow2.f32 %v516_v11  ;;  %v586_v50 = vmul.f32 -0.5, %v1008_v16  ;;  %v570_v6 = vmul.f32 %v989_v63, %v569_v44 }
 0x2b0   :  { %v793_v25 = vpop.eup %792  ;;  %v531_v26 = vmul.f32 0.6931472, %v791_v20  ;;  %v561_v63 = vmul.f32 %v993_v3, %v560_v59  ;;  %v589_v17 = vand.u32 2147483647, %v1008_v16  ;;  %vm563_vm8 = vcmp.lt.f32.partialorder %v562_v1, 0.0004427343 }
 0x2b1   :  { %v1020_v30 = vpop.eup %794  ;;  %v522_v32 = vmul.f32 0.6931472, %v793_v25  ;;  %810 = vlog2.f32 %v583_v24  ;;  %v587_v14 = vadd.f32 1.0, %v586_v50 }
 0x2b2   :  { %v1023_v35 = vpop.eup %796  ;;  %v537_v36 = vsel %vm1010_vm3, %v534_v22, %v531_v26  ;;  %vm590_vm9 = vcmp.lt.f32.partialorder %v589_v17, 0.0004427343 }
 0x2b3   :  { %v799_v40 = vpop.eup %798  ;;  %v593_v41 = vadd.f32 %v537_v36, %v481_v0  ;;  %v528_v42 = vsel %vm527_vm4, %v525_v27, %v522_v32  ;;  %v588_v26 = vmul.f32 %v1008_v16, %v587_v14 }
 0x2b4   :  { %v801_v46 = vpop.eup %800  ;;  %v592_v47 = vadd.f32 %v528_v42, %v480_v2  ;;  %v549_v48 = vmul.f32 0.6931472, %v799_v40 }
 0x2b5   :  { %v803_v51 = vpop.eup %802  ;;  %v601_v52 = vadd.f32 1e-08, %v593_v41  ;;  %v540_v56 = vmul.f32 0.6931472, %v801_v46 }
 0x2b6   :  { %v600_v60 = vadd.f32 1e-08, %v592_v47  ;;  %v555_v61 = vsel %vm1027_vm5, %v552_v49, %v549_v48 }
 0x2b7   :  { %v805_v2 = vpop.eup %804  ;;  %v610_v53 = vsel %vm608_vm2, %v982_v58, %v601_v52  ;;  %v595_v4 = vadd.f32 %v555_v61, %v483_v5  ;;  %v546_v54 = vsel %vm1032_vm6, %v543_v57, %v540_v56 }
 0x2b8   :  { %v807_v8 = vpop.eup %806  ;;  %618 = vst [vmem:[%s1113_s7 + $0x8] sm:$0xff] %v610_v53  ;;  %v609_v9 = vsel %vm608_vm2, %v987_v62, %v600_v60  ;;  %v594_v10 = vadd.f32 %v546_v54, %v482_v13  ;;  %v567_v11 = vmul.f32 0.6931472, %v805_v2  ;;  %v484_v62 = vmax.f32 %v957_v31, 0.0 }
 0x2b9   :  { %617 = vst [vmem:[%s1113_s7] sm:$0xff] %v609_v9  ;;  %v603_v58 = vadd.f32 1e-08, %v595_v4  ;;  %v558_v5 = vmul.f32 0.6931472, %v807_v8  ;;  %v809_v18 = vpop.eup %808 }
 0x2ba   :  { %v602_v19 = vadd.f32 1e-08, %v594_v10  ;;  %v573_v20 = vsel %vm1041_vm7, %v570_v6, %v567_v11  ;;  %v574_v3 = vadd.f32 1.0, %v809_v18  ;;  %v577_v32 = vmul.f32 -0.5, %v809_v18 }
 0x2bb   :  { %v811_v13 = vpop.eup %810  ;;  %v612_v22 = vsel %vm608_vm2, %v998_v7, %v603_v58  ;;  %v597_v21 = vadd.f32 %v573_v20, %v485_v15  ;;  %v564_v23 = vsel %vm563_vm8, %v561_v63, %v558_v5  ;;  %v487_v7 = vmax.f32 %v961_v38, 0.0 }
 0x2bc   :  { %620 = vst [vmem:[%s1113_s7 + $0x18] sm:$0xff] %v612_v22  ;;  %v611_v24 = vsel %vm608_vm2, %v1003_v12, %v602_v19  ;;  %v596_v31 = vadd.f32 %v564_v23, %v484_v62  ;;  %v585_v25 = vmul.f32 0.6931472, %v811_v13  ;;  %812 = vlog2.f32 %v574_v3 }
 0x2bd   :  { %619 = vst [vmem:[%s1113_s7 + $0x10] sm:$0xff] %v611_v24  ;;  %v605_v28 = vadd.f32 1e-08, %v597_v21  ;;  %814 = vtanh.f32 %v966_v45  ;;  %v580_v34 = vand.u32 2147483647, %v809_v18 }
 0x2be   :  { %v604_v15 = vadd.f32 1e-08, %v596_v31  ;;  %v591_v27 = vsel %vm590_vm9, %v588_v26, %v585_v25 }
 0x2bf   :  { %v614_v29 = vsel %vm608_vm2, %v1020_v30, %v605_v28  ;;  %v599_v12 = vadd.f32 %v591_v27, %v487_v7  ;;  %v578_v30 = vadd.f32 1.0, %v577_v32  ;;  %vm581_vm10 = vcmp.lt.f32.partialorder %v580_v34, 0.0004427343 }
 0x2c0   :  { %622 = vst [vmem:[%s1113_s7 + $0x28] sm:$0xff] %v614_v29  ;;  %v613_v16 = vsel %vm608_vm2, %v1023_v35, %v604_v15 }
 0x2c1   :  { %621 = vst [vmem:[%s1113_s7 + $0x20] sm:$0xff] %v613_v16  ;;  %v607_v38 = vadd.f32 1e-08, %v599_v12  ;;  %v579_v35 = vmul.f32 %v809_v18, %v578_v30 }
 0x2c3   :  { %v616_v33 = vsel %vm608_vm2, %v803_v51, %v607_v38 }
 0x2c4   :  { %624 = vst [vmem:[%s1113_s7 + $0x38] sm:$0xff] %v616_v33 }
 0x2c6   :  { %v813_v36 = vpop.eup %812 }
 0x2c7   :  { %v576_v37 = vmul.f32 0.6931472, %v813_v36  ;;  %v815_v43 = vpop.eup %814 }
 0x2c9   :  { %v582_v40 = vsel %vm581_vm10, %v579_v35, %v576_v37 }
 0x2ca   :  { %v598_v41 = vadd.f32 %v582_v40, %v486_v39 }
 0x2cc   :  { %v606_v42 = vadd.f32 1e-08, %v598_v41 }
 0x2ce   :  { %v615_v44 = vsel %vm608_vm2, %v815_v43, %v606_v42 }
 0x2cf   :  { %623 = vst [vmem:[%s1113_s7 + $0x30] sm:$0xff] %v615_v44 }

</bundles_post_ra>
